<compile_context>
chip_gen: v7x
topology: tpu7x:2x2x1
jax: 0.10.0
libtpu: 0.0.40
codegen_flags: <defaults>
</compile_context>

<pallas_src>
import jax
import jax.numpy as jnp
from jax.experimental import pallas as pl
from jax.experimental.pallas import tpu as pltpu

_LANE = 128
_MAX_BLOCK_ROWS = 512  # sublane rows per grid step (multiple of 8); ~1.5 MiB/step -> fits v5e/v6e/v7x VMEM


def _mlp_kernel(params_ref, x_ref, o_ref):
    # params_ref (SMEM, f32[17]):
    #   [0:8]   W1 row-major  (W1[j,0], W1[j,1] for j = 0..3)
    #   [8:12]  b1
    #   [12:16] W2[0, :]
    #   [16]    b2[0]
    # x_ref: (2, block_r, 128)  -> feature planes x0 / x1, lane+sublane dense
    # o_ref: (block_r, 128)
    x0 = x_ref[0]
    x1 = x_ref[1]
    acc = jnp.zeros(x0.shape, jnp.float32) + params_ref[16]
    for j in range(4):  # fully unrolled: 12 VPU FMAs + 4 EUP tanh per vreg, no MXU
        h = x0 * params_ref[2 * j] + x1 * params_ref[2 * j + 1] + params_ref[8 + j]
        acc = acc + jnp.tanh(h) * params_ref[12 + j]
    o_ref[...] = acc.astype(o_ref.dtype)


def mlp_forward(x, w1, b1, w2, b2):
    """x: (..., 2) f32; w1: (4,2), b1: (4,), w2: (1,4), b2: (1,).
    Returns (..., 1) f32, matching the PyTorch Model.forward semantics."""
    lead = x.shape[:-1]
    assert x.shape[-1] == 2, "linear1.in_features == 2"
    m = 1
    for d in lead:
        m *= d

    # ---- lane-dense layout plumbing: (M, 2) -> (2, R, 128) slabs -------------
    r = pl.cdiv(m, _LANE)                              # rows of 128 lanes
    block_r = min(_MAX_BLOCK_ROWS, ((r + 7) // 8) * 8)  # multiple of 8
    r_pad = ((r + block_r - 1) // block_r) * block_r
    m_pad = r_pad * _LANE

    x2d = x.reshape(m, 2).astype(jnp.float32)
    xt = jnp.transpose(x2d)                            # (2, M)
    xt = jnp.pad(xt, ((0, 0), (0, m_pad - m)))         # zero-pad tail (sliced off below)
    xr = xt.reshape(2, r_pad, _LANE)

    params = jnp.concatenate(
        [w1.reshape(-1), b1.reshape(-1), w2.reshape(-1), b2.reshape(-1)]
    ).astype(jnp.float32)                              # f32[17] -> SMEM scalars

    grid = (r_pad // block_r,)
    y = pl.pallas_call(
        _mlp_kernel,
        out_shape=jax.ShapeDtypeStruct((r_pad, _LANE), jnp.float32),
        grid_spec=pltpu.PrefetchScalarGridSpec(
            num_scalar_prefetch=1,
            grid=grid,
            in_specs=[pl.BlockSpec((2, block_r, _LANE), lambda i, p: (0, i, 0))],
            out_specs=pl.BlockSpec((block_r, _LANE), lambda i, p: (i, 0)),
        ),
        compiler_params=pltpu.CompilerParams(
            dimension_semantics=("parallel",),          # shard M across TCs on v7x
        ),
    )(params, xr)

    return y.reshape(-1)[:m].reshape(lead + (1,))


if __name__ == "__main__":
    key = jax.random.PRNGKey(0)
    kx, kw1, kb1, kw2, kb2 = jax.random.split(key, 5)

    # Deterministic parameter init (same shapes as torch.nn.Linear(2,4)/(4,1)).
    w1 = jax.random.normal(kw1, (4, 2), dtype=jnp.float32) * 0.5
    b1 = jax.random.normal(kb1, (4,), dtype=jnp.float32) * 0.1
    w2 = jax.random.normal(kw2, (1, 4), dtype=jnp.float32) * 0.5
    b2 = jax.random.normal(kb2, (1,), dtype=jnp.float32) * 0.1

    # Small shapes consistent with the module: trailing dim == linear1.in_features == 2.
    shapes = [(2, 8, 16, 2), (3, 5, 7, 2)]   # second one exercises the padding path
    for shp in shapes:
        kx, sub = jax.random.split(kx)
        x = jax.random.normal(sub, shp, dtype=jnp.float32)

        y = mlp_forward(x, w1, b1, w2, b2)
        jax.block_until_ready(y)

        # Reference in plain JAX to sanity-check semantics.
        ref = jnp.tanh(x @ w1.T + b1) @ w2.T + b2
        assert y.shape == ref.shape == shp[:-1] + (1,), (y.shape, ref.shape)
        assert jnp.allclose(y, ref, atol=1e-5, rtol=1e-5)

    print("KERNEL_OK")
</pallas_src>

<mosaic_0001>
module attributes {stable_mosaic.version = 11 : i64} {
  func.func @_mlp_kernel(%arg0: i32, %arg1: memref<17xf32, #tpu.memory_space<smem>>, %arg2: memref<2x8x128xf32, #tpu.memory_space<vmem>>, %arg3: memref<8x128xf32, #tpu.memory_space<vmem>>) attributes {dimension_semantics = [#tpu.dimension_semantics<parallel>], iteration_bounds = array<i64: 1>, scalar_prefetch = 1 : i64, scratch_operands = 0 : i64, tpu.core_type = #tpu.core_type<tc>, window_params = [{transform_indices = @transform_0, window_bounds = array<i64: 2, 8, 128>}, {transform_indices = @transform_1, window_bounds = array<i64: 8, 128>}]} {
    %c0 = arith.constant 0 : index
    %c0_0 = arith.constant 0 : index
    %c0_1 = arith.constant 0 : index
    %0 = vector.load %arg2[%c0, %c0_0, %c0_1] : memref<2x8x128xf32, #tpu.memory_space<vmem>>, vector<1x8x128xf32>
    %1 = vector.shape_cast %0 : vector<1x8x128xf32> to vector<8x128xf32>
    %c1 = arith.constant 1 : index
    %c0_2 = arith.constant 0 : index
    %c0_3 = arith.constant 0 : index
    %2 = vector.load %arg2[%c1, %c0_2, %c0_3] : memref<2x8x128xf32, #tpu.memory_space<vmem>>, vector<1x8x128xf32>
    %3 = vector.shape_cast %2 : vector<1x8x128xf32> to vector<8x128xf32>
    %cst = arith.constant 0.000000e+00 : f32
    %4 = vector.broadcast %cst : f32 to vector<8x128xf32>
    %c16 = arith.constant 16 : index
    %5 = memref.load %arg1[%c16] : memref<17xf32, #tpu.memory_space<smem>>
    %6 = vector.broadcast %5 : f32 to vector<8x128xf32>
    %7 = arith.addf %4, %6 : vector<8x128xf32>
    %c0_4 = arith.constant 0 : index
    %8 = memref.load %arg1[%c0_4] : memref<17xf32, #tpu.memory_space<smem>>
    %9 = vector.broadcast %8 : f32 to vector<8x128xf32>
    %10 = arith.mulf %1, %9 : vector<8x128xf32>
    %c1_5 = arith.constant 1 : index
    %11 = memref.load %arg1[%c1_5] : memref<17xf32, #tpu.memory_space<smem>>
    %12 = vector.broadcast %11 : f32 to vector<8x128xf32>
    %13 = arith.mulf %3, %12 : vector<8x128xf32>
    %14 = arith.addf %10, %13 : vector<8x128xf32>
    %c8 = arith.constant 8 : index
    %15 = memref.load %arg1[%c8] : memref<17xf32, #tpu.memory_space<smem>>
    %16 = vector.broadcast %15 : f32 to vector<8x128xf32>
    %17 = arith.addf %14, %16 : vector<8x128xf32>
    %18 = math.tanh %17 : vector<8x128xf32>
    %c12 = arith.constant 12 : index
    %19 = memref.load %arg1[%c12] : memref<17xf32, #tpu.memory_space<smem>>
    %20 = vector.broadcast %19 : f32 to vector<8x128xf32>
    %21 = arith.mulf %18, %20 : vector<8x128xf32>
    %22 = arith.addf %7, %21 : vector<8x128xf32>
    %c2 = arith.constant 2 : index
    %23 = memref.load %arg1[%c2] : memref<17xf32, #tpu.memory_space<smem>>
    %24 = vector.broadcast %23 : f32 to vector<8x128xf32>
    %25 = arith.mulf %1, %24 : vector<8x128xf32>
    %c3 = arith.constant 3 : index
    %26 = memref.load %arg1[%c3] : memref<17xf32, #tpu.memory_space<smem>>
    %27 = vector.broadcast %26 : f32 to vector<8x128xf32>
    %28 = arith.mulf %3, %27 : vector<8x128xf32>
    %29 = arith.addf %25, %28 : vector<8x128xf32>
    %c9 = arith.constant 9 : index
    %30 = memref.load %arg1[%c9] : memref<17xf32, #tpu.memory_space<smem>>
    %31 = vector.broadcast %30 : f32 to vector<8x128xf32>
    %32 = arith.addf %29, %31 : vector<8x128xf32>
    %33 = math.tanh %32 : vector<8x128xf32>
    %c13 = arith.constant 13 : index
    %34 = memref.load %arg1[%c13] : memref<17xf32, #tpu.memory_space<smem>>
    %35 = vector.broadcast %34 : f32 to vector<8x128xf32>
    %36 = arith.mulf %33, %35 : vector<8x128xf32>
    %37 = arith.addf %22, %36 : vector<8x128xf32>
    %c4 = arith.constant 4 : index
    %38 = memref.load %arg1[%c4] : memref<17xf32, #tpu.memory_space<smem>>
    %39 = vector.broadcast %38 : f32 to vector<8x128xf32>
    %40 = arith.mulf %1, %39 : vector<8x128xf32>
    %c5 = arith.constant 5 : index
    %41 = memref.load %arg1[%c5] : memref<17xf32, #tpu.memory_space<smem>>
    %42 = vector.broadcast %41 : f32 to vector<8x128xf32>
    %43 = arith.mulf %3, %42 : vector<8x128xf32>
    %44 = arith.addf %40, %43 : vector<8x128xf32>
    %c10 = arith.constant 10 : index
    %45 = memref.load %arg1[%c10] : memref<17xf32, #tpu.memory_space<smem>>
    %46 = vector.broadcast %45 : f32 to vector<8x128xf32>
    %47 = arith.addf %44, %46 : vector<8x128xf32>
    %48 = math.tanh %47 : vector<8x128xf32>
    %c14 = arith.constant 14 : index
    %49 = memref.load %arg1[%c14] : memref<17xf32, #tpu.memory_space<smem>>
    %50 = vector.broadcast %49 : f32 to vector<8x128xf32>
    %51 = arith.mulf %48, %50 : vector<8x128xf32>
    %52 = arith.addf %37, %51 : vector<8x128xf32>
    %c6 = arith.constant 6 : index
    %53 = memref.load %arg1[%c6] : memref<17xf32, #tpu.memory_space<smem>>
    %54 = vector.broadcast %53 : f32 to vector<8x128xf32>
    %55 = arith.mulf %1, %54 : vector<8x128xf32>
    %c7 = arith.constant 7 : index
    %56 = memref.load %arg1[%c7] : memref<17xf32, #tpu.memory_space<smem>>
    %57 = vector.broadcast %56 : f32 to vector<8x128xf32>
    %58 = arith.mulf %3, %57 : vector<8x128xf32>
    %59 = arith.addf %55, %58 : vector<8x128xf32>
    %c11 = arith.constant 11 : index
    %60 = memref.load %arg1[%c11] : memref<17xf32, #tpu.memory_space<smem>>
    %61 = vector.broadcast %60 : f32 to vector<8x128xf32>
    %62 = arith.addf %59, %61 : vector<8x128xf32>
    %63 = math.tanh %62 : vector<8x128xf32>
    %c15 = arith.constant 15 : index
    %64 = memref.load %arg1[%c15] : memref<17xf32, #tpu.memory_space<smem>>
    %65 = vector.broadcast %64 : f32 to vector<8x128xf32>
    %66 = arith.mulf %63, %65 : vector<8x128xf32>
    %67 = arith.addf %52, %66 : vector<8x128xf32>
    %c0_6 = arith.constant 0 : index
    %c0_7 = arith.constant 0 : index
    %68 = vector.load %arg3[%c0_6, %c0_7] : memref<8x128xf32, #tpu.memory_space<vmem>>, vector<8x128xf32>
    tpu.vector_store %arg3[%c0_6, %c0_7], %67 {strides = array<i32>} : memref<8x128xf32, #tpu.memory_space<vmem>>, vector<8x128xf32>,
    return
  }
  func.func @transform_0(%arg0: i32, %arg1: memref<17xf32, #tpu.memory_space<smem>>) -> (i32, i32, i32) {
    %c0_i32 = arith.constant 0 : i32
    %c0_i32_0 = arith.constant 0 : i32
    %c0_i32_1 = arith.constant 0 : i32
    return %c0_i32, %arg0, %c0_i32_0 : i32, i32, i32
  }
  func.func @transform_1(%arg0: i32, %arg1: memref<17xf32, #tpu.memory_space<smem>>) -> (i32, i32) {
    %c0_i32 = arith.constant 0 : i32
    %c0_i32_0 = arith.constant 0 : i32
    return %arg0, %c0_i32 : i32, i32
  }
}

</mosaic_0001>

<bundles_post_ra>
// kernel: tpu_custom_call.1
= control target key start
LH: loop header
LB: loop body
LE: loop exit
PB: predicated region body
PF: predicated region fallthrough
CT: control target
= control target key end

     0   :  { %s261_s0 = inlined_call_operand.hbm [shape: f32[17], index: 0, kind: input, shape index: {}]   ;;  %s262_s1 = inlined_call_operand.hbm [shape: f32[2,8,128], index: 1, kind: input, shape index: {}]   ;;  %s263_s2 = inlined_call_operand.hbm [shape: f32[8,128], index: 2, kind: output, shape index: {}]  }
   0x1   :  { %s139_s11 = scalar_lea.hbm %s261_s0, 16 }
   0x2   :  { %p140_p0 = scmp.ne.s32.totalorder %s261_s0, %s139_s11  ;;  %p143_p1 = scmp.lt.u32.totalorder %s139_s11, %s261_s0 }
   0x4   :  { %p145_p2 = pnand %p143_p1, %p140_p0 }
   0x6   :  { %148 = shalt.err (!%p145_p2)  }
   0x7   :  { %s199_s16 = smov [#allocation3]  }
   0x8   :  { %8 = dma.hbm_to_smem %s261_s0, 16, %s199_s16, [#allocation2] }
   0x9   :  { %193 = dma.done.wait [#allocation2], 16 }
   0xa   :  { %194 = vsyncadd [#allocation2], 4294967280 }
   0xb   :  { %10 = sfence }
   0xc   :  { %11 = vsyncpa [#allocation5], 0 }
   0xd   :  { %12 = vsyncpa [#allocation6], 0  ;;  %s200_s19 = smov [#allocation4]   ;;  %s149_s23 = scalar_lea.hbm %s262_s1, 256 }
   0xe   :  { %s18_s20 = sshll.u32 %s200_s19, 4  ;;  %p150_p3 = scmp.ne.s32.totalorder %s262_s1, %s149_s23  ;;  %s19_s20 = int_to_ptr.vmem [resolvable:$true] %s18_s20 }
   0xf   :  { %p153_p4 = scmp.lt.u32.totalorder %s149_s23, %s262_s1 }
  0x11   :  { %p155_p5 = pnand %p153_p4, %p150_p3 }
  0x13   :  { %158 = shalt.err (!%p155_p5)
}
  0x14   :  { %s159_s0 = scalar_lea.vmem %s19_s20, 256  ;;  %p164_p7 = scmp.lt.s32.totalorder %s19_s20, %s19_s20 }
  0x15   :  { %p160_p6 = scmp.ne.s32.totalorder %s19_s20, %s159_s0  ;;  %p165_p8 = scmp.lt.s32.totalorder %s159_s0, %s159_s0 }
  0x17   :  { %p166_p9 = por %p165_p8, %p164_p7 }
  0x19   :  { %p167_p10 = pnand %p166_p9, %p160_p6 }
  0x1b   :  { %170 = shalt.err (!%p167_p10)
}
  0x1c   :  { %s201_s28 = smov 128   ;;  %s202_s29 = smov 8  }
  0x1d   :  { %24 = dma.hbm_to_vmem [thread:$0]  %s262_s1, 256, %s19_s20, [#allocation5], %s201_s28, %s201_s28, %s202_s29  }
  0x1e   :  { %195 = dma.done.wait [#allocation5], 256  }
  0x1f   :  { %196 = vsyncadd [#allocation5], 4294967040  ;;  %s34_s4 = sld [smem:[#allocation3]]  ;;  %s111_s5 = sld [smem:[#allocation3 + $0x1]]  ;;  %v28_v0 = vld [vmem:[#allocation4] sm:$0xff]  ;;  %v30_v1 = vld [vmem:[#allocation4 + $0x8] sm:$0xff] }
  0x20   :  { %s112_s6 = sld [smem:[#allocation3 + $0x8]]  ;;  %s114_s7 = sld [smem:[#allocation3 + $0x2]] }
  0x21   :  { %s115_s8 = sld [smem:[#allocation3 + $0x3]]  ;;  %s243_s9 = sld [smem:[#allocation3 + $0x9]] }
  0x22   :  { %s118_s10 = sld [smem:[#allocation3 + $0x4]]  ;;  %s119_s11 = sld [smem:[#allocation3 + $0x5]] }
  0x23   :  { %s245_s12 = sld [smem:[#allocation3 + $0xa]]  ;;  %s122_s13 = sld [smem:[#allocation3 + $0x6]] }
  0x24   :  { %s123_s1 = sld [smem:[#allocation3 + $0x7]]  ;;  %s124_s14 = sld [smem:[#allocation3 + $0xb]] }
  0x25   :  { %v35_v2 = vstv %s34_s4  ;;  %v38_v4 = vstv %s111_s5  ;;  %s113_s15 = sld [smem:[#allocation3 + $0xc]]  ;;  %s110_s16 = sld [smem:[#allocation3 + $0x10]] }
  0x26   :  { %v36_v3 = vmul.f32 %v35_v2, %v28_v0  ;;  %v39_v5 = vmul.f32 %v38_v4, %v30_v1  ;;  %v50_v6 = vstv %s114_s7  ;;  %v42_v7 = vstv %s112_s6  ;;  %s117_s17 = sld [smem:[#allocation3 + $0xd]]  ;;  %s121_s18 = sld [smem:[#allocation3 + $0xe]] }
  0x27   :  { %v51_v8 = vmul.f32 %v50_v6, %v28_v0  ;;  %v53_v9 = vstv %s115_s8  ;;  %v57_v13 = vstv %s243_s9  ;;  %s125_s19 = sld [smem:[#allocation3 + $0xf]]  ;;  %s203_s20 = smov [#allocation7]  }
  0x28   :  { %v40_v10 = vadd.f32 %v39_v5, %v36_v3  ;;  %v54_v11 = vmul.f32 %v53_v9, %v30_v1  ;;  %v65_v12 = vstv %s118_s10  ;;  %v68_v15 = vstv %s119_s11  ;;  %s101_s21 = sshll.u32 %s203_s20, 4  ;;  %s102_s21 = int_to_ptr.vmem [resolvable:$true] %s101_s21 }
  0x29   :  { %v66_v14 = vmul.f32 %v65_v12, %v28_v0  ;;  %v69_v18 = vmul.f32 %v68_v15, %v30_v1  ;;  %v72_v19 = vstv %s245_s12  ;;  %v80_v20 = vstv %s122_s13  ;;  %s171_s22 = scalar_lea.vmem %s102_s21, 128  ;;  %p176_p12 = scmp.lt.s32.totalorder %s102_s21, %s102_s21 }
  0x2a   :  { %v43_v16 = vadd.f32 %v42_v7, %v40_v10  ;;  %v55_v17 = vadd.f32 %v54_v11, %v51_v8  ;;  %v83_v21 = vstv %s123_s1  ;;  %v81_v24 = vmul.f32 %v80_v20, %v28_v0  ;;  %p172_p11 = scmp.ne.s32.totalorder %s102_s21, %s171_s22  ;;  %p177_p13 = scmp.lt.s32.totalorder %s171_s22, %s171_s22 }
  0x2b   :  { %v70_v23 = vadd.f32 %v69_v18, %v66_v14  ;;  %v84_v25 = vmul.f32 %v83_v21, %v30_v1  ;;  %v87_v27 = vstv %s124_s14  ;;  %v46_v30 = vstv %s113_s15 }
  0x2c   :  { %131 = vtanh.f32 %v43_v16  ;;  %v58_v22 = vadd.f32 %v57_v13, %v55_v17  ;;  %v32_v32 = vstv %s110_s16  ;;  %v61_v33 = vstv %s117_s17  ;;  %p178_p0 = por %p177_p13, %p176_p12 }
  0x2d   :  { %v73_v26 = vadd.f32 %v72_v19, %v70_v23  ;;  %v85_v28 = vadd.f32 %v84_v25, %v81_v24  ;;  %v76_v36 = vstv %s121_s18  ;;  %v91_v42 = vstv %s125_s19 }
  0x2e   :  { %133 = vtanh.f32 %v58_v22  ;;  %p179_p1 = pnand %p178_p0, %p172_p11 }
  0x2f   :  { %135 = vtanh.f32 %v73_v26  ;;  %v88_v29 = vadd.f32 %v87_v27, %v85_v28 }
  0x31   :  { %137 = vtanh.f32 %v88_v29 }
  0x36   :  { %v132_v31 = vpop.eup %131 }
  0x37   :  { %v47_v34 = vmul.f32 %v132_v31, %v46_v30 }
  0x38   :  { %v134_v35 = vpop.eup %133 }
  0x39   :  { %v48_v37 = vadd.f32 %v47_v34, %v32_v32  ;;  %v62_v38 = vmul.f32 %v134_v35, %v61_v33  ;;  %v136_v39 = vpop.eup %135 }
  0x3a   :  { %v77_v41 = vmul.f32 %v136_v39, %v76_v36 }
  0x3b   :  { %v63_v40 = vadd.f32 %v62_v38, %v48_v37  ;;  %v138_v43 = vpop.eup %137 }
  0x3c   :  { %v92_v45 = vmul.f32 %v138_v43, %v91_v42 }
  0x3d   :  { %v78_v44 = vadd.f32 %v77_v41, %v63_v40 }
  0x3f   :  { %v93_v46 = vadd.f32 %v92_v45, %v78_v44 }
  0x41   :  { %94 = vst [vmem:[#allocation7] sm:$0xff] %v93_v46 }
  0x42   :  { %182 = shalt.err (!%p179_p1)
}
  0x43   :  { %s183_s25 = scalar_lea.hbm %s263_s2, 128 }
  0x44   :  { %p184_p2 = scmp.ne.s32.totalorder %s263_s2, %s183_s25  ;;  %p187_p3 = scmp.lt.u32.totalorder %s183_s25, %s263_s2 }
  0x46   :  { %p189_p4 = pnand %p187_p3, %p184_p2 }
  0x48   :  { %192 = shalt.err (!%p189_p4)
}
  0x49   :  { %104 = dma.vmem_to_hbm [thread:$0]  %s102_s21, 128, %s263_s2, [#allocation6]  }
  0x4a   :  { %197 = dma.done.wait [#allocation6], 128  }
  0x4b   :  { %198 = vsyncadd [#allocation6], 4294967168 }
  0x4c   :  { %108 = vsyncpa [#allocation5], 1 }
  0x4d   :  { %109 = vsyncpa [#allocation6], 1 }

</bundles_post_ra>
